<compile_context>
chip_gen: v6e
topology: v6e:2x2x1
jax: 0.10.0
libtpu: 0.0.40
codegen_flags: <defaults>
</compile_context>

<pallas_src>
import jax
import jax.numpy as jnp
from jax.experimental import pallas as pl
from jax.experimental.pallas import tpu as pltpu

IN_FEATURES = 768
OUT_FEATURES = 64
DEFAULT_TB = 1024          # batch tile (sweepable: 512 / 1024 / 2048)


def _round_up(x, m):
    return ((x + m - 1) // m) * m


def reduce_kernel(x_ref, w_ref, b_ref, o_ref):
    # x_ref: [TB, 768] (bf16)  w_ref: [768, 64] (bf16)
    # b_ref: [1, 64]   (f32)   o_ref: [TB, 64]  (f32)
    acc = jnp.dot(x_ref[...], w_ref[...], preferred_element_type=jnp.float32)
    o_ref[...] = (acc + b_ref[...].astype(jnp.float32)).astype(o_ref.dtype)


def prepare_reduce_params(weight, bias, *, param_dtype=jnp.bfloat16):
    """One-time (model-load) param prep.

    weight: [64, 768] (PyTorch nn.Linear layout [out, in])
    bias  : [64]
    returns (w_t [768, 64] param_dtype, b [1, 64] float32).
    """
    w_t = jnp.asarray(weight).T.astype(param_dtype)                 # [768, 64]
    b = jnp.asarray(bias).astype(jnp.float32).reshape(1, OUT_FEATURES)
    return w_t, b


def reduced_forward(x_pooled, w_t, b, *, tb=DEFAULT_TB):
    """Pallas equivalent of Reduced.reduce applied to the pooler output.

    x_pooled : [B, 768]  (bf16 preferred; cast at the producer, not here)
    w_t      : [768, 64] (from prepare_reduce_params)
    b        : [1, 64]   float32
    returns  : [B, 64]   float32
    """
    B = x_pooled.shape[0]

    # Pad at most to the next multiple of 8 (sublane) — never to a multiple
    # of TB — so we never materialize a second full copy of the activation.
    B_pad = _round_up(max(B, 1), 8)
    x_in = x_pooled if B_pad == B else jnp.pad(x_pooled, ((0, B_pad - B), (0, 0)))

    TB = min(tb, B_pad)
    # Ensure >= 2 grid steps when there is enough work so v7x's 2 TensorCores
    # can both participate ("parallel" sharding of the batch axis).
    if B_pad >= 16 and TB > B_pad // 2:
        TB = _round_up(B_pad // 2, 8)
    grid = (pl.cdiv(B_pad, TB),)

    x_itemsize = jnp.dtype(x_in.dtype).itemsize
    w_itemsize = jnp.dtype(w_t.dtype).itemsize
    cost = pl.CostEstimate(
        flops=2 * B_pad * IN_FEATURES * OUT_FEATURES,
        transcendentals=0,
        bytes_accessed=(B_pad * IN_FEATURES * x_itemsize
                        + IN_FEATURES * OUT_FEATURES * w_itemsize
                        + B_pad * OUT_FEATURES * 4),
    )

    out = pl.pallas_call(
        reduce_kernel,
        out_shape=jax.ShapeDtypeStruct((B_pad, OUT_FEATURES), jnp.float32),
        grid_spec=pltpu.PrefetchScalarGridSpec(
            num_scalar_prefetch=0,
            grid=grid,
            in_specs=[
                pl.BlockSpec((TB, IN_FEATURES), lambda i: (i, 0)),
                # Constant index maps keep weight/bias VMEM-resident across
                # all grid steps.
                pl.BlockSpec((IN_FEATURES, OUT_FEATURES), lambda i: (0, 0)),
                pl.BlockSpec((1, OUT_FEATURES), lambda i: (0, 0)),
            ],
            out_specs=pl.BlockSpec((TB, OUT_FEATURES), lambda i: (i, 0)),
        ),
        compiler_params=pltpu.CompilerParams(
            dimension_semantics=("parallel",),
        ),
        cost_estimate=cost,
    )(x_in, w_t, b)

    return out if B_pad == B else out[:B]


if __name__ == "__main__":
    key = jax.random.PRNGKey(0)
    k_x, k_w, k_b = jax.random.split(key, 3)

    B = 2
    # Deterministic stand-in for camembert(x)[1] (pooler output).  Cast to
    # bf16 at the "producer", as the encoder stack would normally emit.
    x_pooled_f32 = jax.random.normal(k_x, (B, IN_FEATURES), dtype=jnp.float32)
    x_pooled = x_pooled_f32.astype(jnp.bfloat16)

    # Deterministic init of the reduce Linear parameters (PyTorch layout).
    bound = 1.0 / jnp.sqrt(IN_FEATURES)
    weight = jax.random.uniform(
        k_w, (OUT_FEATURES, IN_FEATURES), dtype=jnp.float32,
        minval=-bound, maxval=bound)
    bias = jax.random.uniform(
        k_b, (OUT_FEATURES,), dtype=jnp.float32, minval=-bound, maxval=bound)

    # One-time param prep (transpose + bf16 cast), hoisted out of the
    # per-call path.
    w_t, b = prepare_reduce_params(weight, bias)

    out = reduced_forward(x_pooled, w_t, b)
    out = jax.block_until_ready(out)

    # Reference: same bf16-rounded inputs, f32 math (matches the f32 MXU
    # accumulation up to summation-order rounding).
    ref = (x_pooled.astype(jnp.float32) @ w_t.astype(jnp.float32)
           + b.astype(jnp.float32))
    assert out.shape == (B, OUT_FEATURES)
    assert jnp.allclose(out, ref, atol=2e-2, rtol=2e-2)

    print("KERNEL_OK")
</pallas_src>

<mosaic_0001>
module attributes {stable_mosaic.version = 11 : i64} {
  func.func @reduce_kernel(%arg0: i32, %arg1: memref<8x768xbf16, #tpu.memory_space<vmem>>, %arg2: memref<768x64xbf16, #tpu.memory_space<vmem>>, %arg3: memref<1x64xf32, #tpu.memory_space<vmem>>, %arg4: memref<8x64xf32, #tpu.memory_space<vmem>>) attributes {dimension_semantics = [#tpu.dimension_semantics<parallel>], iteration_bounds = array<i64: 1>, scalar_prefetch = 0 : i64, scratch_operands = 0 : i64, tpu.core_type = #tpu.core_type<tc>, window_params = [{transform_indices = @transform_0, window_bounds = array<i64: 8, 768>}, {pipeline_mode = #tpu.pipeline_mode<synchronous>, transform_indices = @transform_1, window_bounds = array<i64: 768, 64>}, {pipeline_mode = #tpu.pipeline_mode<synchronous>, transform_indices = @transform_2, window_bounds = array<i64: 1, 64>}, {transform_indices = @transform_3, window_bounds = array<i64: 8, 64>}]} {
    %c0 = arith.constant 0 : index
    %c0_0 = arith.constant 0 : index
    %0 = vector.load %arg1[%c0, %c0_0] : memref<8x768xbf16, #tpu.memory_space<vmem>>, vector<8x768xbf16>
    %c0_1 = arith.constant 0 : index
    %c0_2 = arith.constant 0 : index
    %1 = vector.load %arg2[%c0_1, %c0_2] : memref<768x64xbf16, #tpu.memory_space<vmem>>, vector<768x64xbf16>
    %cst = arith.constant dense<0.000000e+00> : vector<8x64xf32>
    %2 = tpu.matmul %0, %1, %cst {dimension_numbers = #tpu.dot_dimension_numbers<[1], [0], [0], [1], [0, 0, 1, 1], [], []>} : vector<8x768xbf16>, vector<768x64xbf16>, vector<8x64xf32> -> vector<8x64xf32>
    %c0_3 = arith.constant 0 : index
    %c0_4 = arith.constant 0 : index
    %3 = vector.load %arg3[%c0_3, %c0_4] : memref<1x64xf32, #tpu.memory_space<vmem>>, vector<1x64xf32>
    %4 = vector.broadcast %3 : vector<1x64xf32> to vector<8x64xf32>
    %5 = arith.addf %2, %4 : vector<8x64xf32>
    %c0_5 = arith.constant 0 : index
    %c0_6 = arith.constant 0 : index
    %6 = vector.load %arg4[%c0_5, %c0_6] : memref<8x64xf32, #tpu.memory_space<vmem>>, vector<8x64xf32>
    tpu.vector_store %arg4[%c0_5, %c0_6], %5 {strides = array<i32>} : memref<8x64xf32, #tpu.memory_space<vmem>>, vector<8x64xf32>,
    return
  }
  func.func @transform_0(%arg0: i32) -> (i32, i32) {
    %c0_i32 = arith.constant 0 : i32
    %c0_i32_0 = arith.constant 0 : i32
    return %arg0, %c0_i32 : i32, i32
  }
  func.func @transform_1(%arg0: i32) -> (i32, i32) {
    %c0_i32 = arith.constant 0 : i32
    %c0_i32_0 = arith.constant 0 : i32
    %c0_i32_1 = arith.constant 0 : i32
    return %c0_i32, %c0_i32_0 : i32, i32
  }
  func.func @transform_2(%arg0: i32) -> (i32, i32) {
    %c0_i32 = arith.constant 0 : i32
    %c0_i32_0 = arith.constant 0 : i32
    %c0_i32_1 = arith.constant 0 : i32
    return %c0_i32, %c0_i32_0 : i32, i32
  }
  func.func @transform_3(%arg0: i32) -> (i32, i32) {
    %c0_i32 = arith.constant 0 : i32
    %c0_i32_0 = arith.constant 0 : i32
    return %arg0, %c0_i32 : i32, i32
  }
}

</mosaic_0001>

<bundles_post_ra>
// kernel: tpu_custom_call.1
= control target key start
LH: loop header
LB: loop body
LE: loop exit
PB: predicated region body
PF: predicated region fallthrough
CT: control target
= control target key end

     0   :  { %s945_s0 = inlined_call_operand.vmem [shape: bf16[8,768], index: 0, kind: input, shape index: {}]   ;;  %s946_s1 = inlined_call_operand.vmem [shape: bf16[768,64], index: 1, kind: input, shape index: {}]   ;;  %s947_s2 = inlined_call_operand.vmem [shape: f32[1,64], index: 2, kind: input, shape index: {}]   ;;  %s948_s3 = inlined_call_operand.hbm [shape: f32[8,64], index: 3, kind: output, shape index: {}]  }
   0x1   :  { %v689_v0 = vld [vmem:[%s946_s1 + $0x78] sm:$0xff]   ;;  %v693_v4 = vld [vmem:[%s946_s1 + $0x70] sm:$0xff]   ;;  %v697_v8 = vld [vmem:[%s946_s1 + $0x68] sm:$0xff]  }
   0x2   :  { %v690_v1 = vld [vmem:[%s946_s1 + $0x38] sm:$0xff]   ;;  %622 = vmatprep.subr.bf16.mxu0 %v689_v0  ;;  %v694_v5 = vld [vmem:[%s946_s1 + $0x30] sm:$0xff]   ;;  %v698_v9 = vld [vmem:[%s946_s1 + $0x28] sm:$0xff]  }
   0x3   :  { %v691_v2 = vld [vmem:[%s946_s1 + $0xf8] sm:$0xff]   ;;  %623 = vmatpush3.bf16.msra.mxu0 %v690_v1  ;;  %v695_v6 = vld [vmem:[%s946_s1 + $0xf0] sm:$0xff]   ;;  %v699_v10 = vld [vmem:[%s946_s1 + $0xe8] sm:$0xff]  }
   0x4   :  { %v692_v3 = vld [vmem:[%s946_s1 + $0xb8] sm:$0xff]   ;;  %644 = vmatprep.subr.bf16.mxu1 %v691_v2  ;;  %624 = vmatprep.subr.bf16.mxu0 %v693_v4  ;;  %v696_v7 = vld [vmem:[%s946_s1 + $0xb0] sm:$0xff]   ;;  %v700_v11 = vld [vmem:[%s946_s1 + $0xa8] sm:$0xff]  }
   0x5   :  { %645 = vmatpush3.bf16.msra.mxu1 %v692_v3  ;;  %v701_v12 = vld [vmem:[%s946_s1 + $0x60] sm:$0xff]   ;;  %v705_v16 = vld [vmem:[%s946_s1 + $0x58] sm:$0xff]   ;;  %v709_v20 = vld [vmem:[%s946_s1 + $0x50] sm:$0xff]  }
   0x6   :  { %646 = vmatprep.subr.bf16.mxu1 %v695_v6  ;;  %v702_v13 = vld [vmem:[%s946_s1 + $0x20] sm:$0xff]   ;;  %v706_v17 = vld [vmem:[%s946_s1 + $0x18] sm:$0xff]   ;;  %v710_v21 = vld [vmem:[%s946_s1 + $0x10] sm:$0xff]  }
   0x7   :  { %625 = vmatpush3.bf16.msra.mxu0 %v694_v5  ;;  %v703_v14 = vld [vmem:[%s946_s1 + $0xe0] sm:$0xff]   ;;  %v707_v18 = vld [vmem:[%s946_s1 + $0xd8] sm:$0xff]   ;;  %v711_v22 = vld [vmem:[%s946_s1 + $0xd0] sm:$0xff]  }
   0x8   :  { %626 = vmatprep.subr.bf16.mxu0 %v697_v8  ;;  %v704_v15 = vld [vmem:[%s946_s1 + $0xa0] sm:$0xff]   ;;  %v708_v19 = vld [vmem:[%s946_s1 + $0x98] sm:$0xff]   ;;  %v712_v23 = vld [vmem:[%s946_s1 + $0x90] sm:$0xff]  }
   0x9   :  { %647 = vmatpush3.bf16.msra.mxu1 %v696_v7  ;;  %v713_v24 = vld [vmem:[%s946_s1 + $0x48] sm:$0xff]   ;;  %v717_v28 = vld [vmem:[%s946_s1 + $0x40] sm:$0xff]   ;;  %v723_v35 = vld [vmem:[%s946_s1 + $0x178] sm:$0xff]  }
   0xa   :  { %648 = vmatprep.subr.bf16.mxu1 %v699_v10  ;;  %v714_v25 = vld [vmem:[%s946_s1 + $0x8] sm:$0xff]   ;;  %v718_v29 = vld [vmem:[%s946_s1] sm:$0xff]   ;;  %v726_v39 = vld [vmem:[%s946_s1 + $0x138] sm:$0xff]  }
   0xb   :  { %627 = vmatpush3.bf16.msra.mxu0 %v698_v9  ;;  %v715_v26 = vld [vmem:[%s946_s1 + $0xc8] sm:$0xff]   ;;  %v719_v30 = vld [vmem:[%s946_s1 + $0xc0] sm:$0xff]   ;;  %v727_v40 = vld [vmem:[%s946_s1 + $0x170] sm:$0xff]  }
   0xc   :  { %628 = vmatprep.subr.bf16.mxu0 %v701_v12  ;;  %v716_v27 = vld [vmem:[%s946_s1 + $0x88] sm:$0xff]   ;;  %v16_v31 = vld [vmem:[%s945_s0] sm:$0xff]  ;;  %v728_v41 = vld [vmem:[%s946_s1 + $0x130] sm:$0xff]  }
   0xd   :  { %649 = vmatpush3.bf16.msra.mxu1 %v700_v11  ;;  %v568_v32 = vcombine.low %v16_v31, %v16_v31  ;;  %v569_v33 = vcombine.high %v16_v31, %v16_v31  ;;  %v722_v34 = vld [vmem:[%s946_s1 + $0x80] sm:$0xff]   ;;  %v17_v36 = vld [vmem:[%s945_s0 + $0x8] sm:$0xff]  ;;  %v733_v46 = vld [vmem:[%s946_s1 + $0x158] sm:$0xff]  }
   0xe   :  { %650 = vmatprep.subr.bf16.mxu1 %v703_v14  ;;  %v570_v37 = vcombine.low %v17_v36, %v17_v36  ;;  %v571_v38 = vcombine.high %v17_v36, %v17_v36  ;;  %v729_v42 = vld [vmem:[%s946_s1 + $0x168] sm:$0xff]   ;;  %v731_v44 = vld [vmem:[%s946_s1 + $0x160] sm:$0xff]   ;;  %v734_v47 = vld [vmem:[%s946_s1 + $0x118] sm:$0xff]  }
   0xf   :  { %629 = vmatpush3.bf16.msra.mxu0 %v702_v13  ;;  %463 = vmatprep.mubr.bf16.mxu0 %v569_v33  ;;  %v730_v43 = vld [vmem:[%s946_s1 + $0x128] sm:$0xff]   ;;  %v732_v45 = vld [vmem:[%s946_s1 + $0x120] sm:$0xff]   ;;  %v18_v48 = vld [vmem:[%s945_s0 + $0x10] sm:$0xff] }
  0x10   :  { %630 = vmatprep.subr.bf16.mxu0 %v705_v16  ;;  %503 = vmatprep.mubr.bf16.mxu1 %v571_v38  ;;  %v735_v49 = vld [vmem:[%s946_s1 + $0x150] sm:$0xff]   ;;  %v573_v50 = vcombine.high %v18_v48, %v18_v48 }
  0x11   :  { %651 = vmatpush3.bf16.msra.mxu1 %v704_v15 }
  0x12   :  { %652 = vmatprep.subr.bf16.mxu1 %v707_v18 }
  0x13   :  { %631 = vmatpush3.bf16.msra.mxu0 %v706_v17 }
  0x14   :  { %632 = vmatprep.subr.bf16.mxu0 %v709_v20 }
  0x15   :  { %653 = vmatpush3.bf16.msra.mxu1 %v708_v19 }
  0x16   :  { %654 = vmatprep.subr.bf16.mxu1 %v711_v22 }
  0x17   :  { %633 = vmatpush3.bf16.msra.mxu0 %v710_v21 }
  0x18   :  { %634 = vmatprep.subr.bf16.mxu0 %v713_v24 }
  0x19   :  { %655 = vmatpush3.bf16.msra.mxu1 %v712_v23 }
  0x1a   :  { %656 = vmatprep.subr.bf16.mxu1 %v715_v26 }
  0x1b   :  { %635 = vmatpush3.bf16.msra.mxu0 %v714_v25 }
  0x1c   :  { %636 = vmatprep.subr.bf16.mxu0 %v717_v28 }
  0x1d   :  { %657 = vmatpush3.bf16.msra.mxu1 %v716_v27 }
  0x1e   :  { %658 = vmatprep.subr.bf16.mxu1 %v719_v30 }
  0x1f   :  { %637 = vmatpush3.bf16.msra.mxu0 %v718_v29 }
  0x20   :  { %666 = vmatprep.subr.bf16.mxu0 %v723_v35 }
  0x21   :  { %659 = vmatpush3.bf16.msra.mxu1 %v722_v34 }
  0x22   :  { %464 = vmatmul.mubr.bf16.vlgmr.msra.gmra.mxu0 %v568_v32 }
  0x23   :  { %667 = vmatpush3.bf16.msra.mxu0 %v726_v39 }
  0x24   :  { %504 = vmatmul.mubr.bf16.vlgmr.msra.gmra.mxu1 %v570_v37  ;;  %668 = vmatprep.subr.bf16.mxu0 %v727_v40 }
  0x27   :  { %669 = vmatpush3.bf16.msra.mxu0 %v728_v41 }
  0x28   :  { %670 = vmatprep.subr.bf16.mxu0 %v729_v42 }
  0x2b   :  { %671 = vmatpush3.bf16.msra.mxu0 %v730_v43 }
  0x2c   :  { %672 = vmatprep.subr.bf16.mxu0 %v731_v44 }
  0x2f   :  { %673 = vmatpush3.bf16.msra.mxu0 %v732_v45 }
  0x30   :  { %674 = vmatprep.subr.bf16.mxu0 %v733_v46 }
  0x31   :  { %8 = vsyncpa [#allocation3], 0  ;;  %543 = vmatprep.mubr.bf16.mxu0 %v573_v50  ;;  %v736_v51 = vld [vmem:[%s946_s1 + $0x110] sm:$0xff]   ;;  %v737_v52 = vld [vmem:[%s946_s1 + $0x148] sm:$0xff]   ;;  %v572_v56 = vcombine.low %v18_v48, %v18_v48  ;;  %vm551_vm0 = vcmask 523264  }
  0x32   :  { %v738_v53 = vld [vmem:[%s946_s1 + $0x108] sm:$0xff]   ;;  %v739_v54 = vld [vmem:[%s946_s1 + $0x140] sm:$0xff]  }
  0x33   :  { %675 = vmatpush3.bf16.msra.mxu0 %v734_v47  ;;  %v740_v55 = vld [vmem:[%s946_s1 + $0x100] sm:$0xff]   ;;  %s765_s1 = smov [#allocation2]  }
  0x34   :  { %676 = vmatprep.subr.bf16.mxu0 %v735_v49  ;;  %v567_v2 = vld [vmem:[%s947_s2] ss:$0 sm:$0xff]  ;;  %s559_s7 = sshll.u32 %s765_s1, 4  ;;  %s560_s7 = int_to_ptr.vmem [resolvable:$true] %s559_s7 }
  0x35   :  { %s743_s8 = scalar_lea.vmem %s560_s7, 128  ;;  %p748_p1 = scmp.lt.s32.totalorder %s560_s7, %s560_s7 }
  0x36   :  { %p744_p0 = scmp.ne.s32.totalorder %s560_s7, %s743_s8  ;;  %p749_p2 = scmp.lt.s32.totalorder %s743_s8, %s743_s8 }
  0x37   :  { %677 = vmatpush3.bf16.msra.mxu0 %v736_v51 }
  0x38   :  { %678 = vmatprep.subr.bf16.mxu0 %v737_v52  ;;  %p750_p3 = por %p749_p2, %p748_p1 }
  0x3a   :  { %p751_p4 = pnand %p750_p3, %p744_p0 }
  0x3b   :  { %679 = vmatpush3.bf16.msra.mxu0 %v738_v53 }
  0x3c   :  { %680 = vmatprep.subr.bf16.mxu0 %v739_v54 }
  0x3f   :  { %681 = vmatpush3.bf16.msra.mxu0 %v740_v55 }
  0x42   :  { %544 = vmatmul.mubr.bf16.vlgmr.msra.gmra.mxu0 %v572_v56 }
  0xe2   :  { %v638_v57 = vpop.f32.mrf.mxu0 }
  0xe4   :  { %v639_v58 = vpop.f32.mrf.mxu0  ;;  %v660_v59 = vpop.f32.mrf.mxu1 }
  0xe5   :  { %v640_v1 = vadd.f32 %v639_v58, %v638_v57 }
  0xe6   :  { %v641_v60 = vpop.f32.mrf.mxu0  ;;  %v661_v61 = vpop.f32.mrf.mxu1 }
  0xe7   :  { %v466_v3 = vadd.f32 %v640_v1, %v567_v2  ;;  %v662_v4 = vadd.f32 %v661_v61, %v660_v59 }
  0xe8   :  { %v642_v62 = vpop.f32.mrf.mxu0  ;;  %v663_v63 = vpop.f32.mrf.mxu1 }
  0xe9   :  { %v506_v7 = vadd.f32 %v662_v4, %v466_v3 }
  0xea   :  { %v664_v0 = vpop.f32.mrf.mxu1 }
 0x102   :  { %v682_v5 = vpop.f32.mrf.mxu0 }
 0x104   :  { %v683_v6 = vpop.f32.mrf.mxu0 }
 0x105   :  { %v684_v8 = vadd.f32 %v683_v6, %v682_v5 }
 0x106   :  { %v685_v9 = vpop.f32.mrf.mxu0 }
 0x107   :  { %v546_v10 = vadd.f32 %v684_v8, %v506_v7 }
 0x108   :  { %v686_v11 = vpop.f32.mrf.mxu0 }
 0x109   :  { %552 = vst.msk [vmem:[#allocation2] sm:$0xff] %vm551_vm0, %v546_v10 }
 0x10a   :  { %754 = shalt.err (!%p751_p4)
}
 0x10b   :  { %562 = dma.vmem_to_hbm [thread:$0]  %s560_s7, 128, %s948_s3, [#allocation3]  }
 0x10c   :  { %763 = dma.done.wait [#allocation3], 128  }
 0x10d   :  { %764 = vsyncadd [#allocation3], 4294967168 }
 0x10e   :  { %566 = vsyncpa [#allocation3], 1 }

</bundles_post_ra>
